<compile_context>
chip_gen: v7x
topology: tpu7x:2x2x1
jax: 0.10.0
libtpu: 0.0.40
codegen_flags: <defaults>
</compile_context>

<pallas_src>
import functools

import jax
import jax.numpy as jnp
from jax import lax
from jax.experimental import pallas as pl
from jax.experimental.pallas import tpu as pltpu


def _round_up(v, m):
    return ((v + m - 1) // m) * m


def _aseirnn_kernel(x_ref, w_ih_ref, w_hh_ref, mask_ref, bias_ref,
                    alpha_ref, alpha_s_ref,
                    rnn_out_ref,
                    xproj_ref, eff_w_ref, state_ref, outp_ref, syn_ref,
                    *, chunk_len, batch_block, unroll):
    """One (batch_block, time_chunk) grid step of the ASEIRNN recurrence.

    x_ref      : (Tc, Bb, I)   input chunk (pipelined in)
    w_ih_ref   : (I, Hp)       input2h weight, pre-transposed
    w_hh_ref   : (Hp, Hp)      h2h raw weight, pre-transposed
    mask_ref   : (Hp, Hp)      E/I sign mask, pre-transposed
    bias_ref   : (1, Hp)       b_ih + b_hh (folded)
    alpha_ref, alpha_s_ref : (1, Hp)
    rnn_out_ref: (Tc, Bb, Hp)  output chunk (pipelined out)
    scratch    : xproj (Tc,Bb,Hp), eff_w (Hp,Hp), state/output/synapse (Bb,Hp)
    """
    tc = pl.program_id(1)
    hp = rnn_out_ref.shape[-1]

    # Init persistent state + effective E/I weight at the start of each batch
    # block's time sweep.
    @pl.when(tc == 0)
    def _():
        eff_w_ref[...] = jnp.abs(w_hh_ref[...]) * mask_ref[...]
        state_ref[...] = jnp.zeros_like(state_ref)
        outp_ref[...] = jnp.zeros_like(outp_ref)
        syn_ref[...] = jnp.zeros_like(syn_ref)

    # Fused input projection for the whole chunk: ONE lane-dense MXU matmul
    # instead of Tc tiny per-step ones (leading-dim reshapes are free).
    in_dim = x_ref.shape[-1]
    x2d = x_ref[...].reshape(chunk_len * batch_block, in_dim)
    xproj_ref[...] = jnp.dot(
        x2d, w_ih_ref[...], preferred_element_type=jnp.float32
    ).reshape(chunk_len, batch_block, hp)

    # Keep per-neuron params as (1, Hp); the VPU broadcasts them implicitly.
    bias = bias_ref[...]
    alpha = alpha_ref[...]
    alpha_s = alpha_s_ref[...]

    def step(t, carry):
        state, output, syn = carry
        rec = jnp.dot(output, eff_w_ref[...],
                      preferred_element_type=jnp.float32)          # (Bb, Hp)
        total = xproj_ref[t] + rec + bias
        s_new = alpha_s * (total - syn) + syn
        state = alpha * (jnp.tanh(s_new) - state) + state
        # TODO(synk): recurrent noise (+ sigma_rec * randn) omitted; the module
        # default sigma_rec=0 makes it a no-op (would use pltpu.prng_random_bits).
        output = jnp.tanh(state)
        rnn_out_ref[t] = output
        return state, output, s_new

    carry0 = (state_ref[...], outp_ref[...], syn_ref[...])
    state, output, syn = lax.fori_loop(0, chunk_len, step, carry0,
                                       unroll=unroll)

    # Carry recurrent state to the next time chunk.
    state_ref[...] = state
    outp_ref[...] = output
    syn_ref[...] = syn


def aseirnn_forward(x, w_ih, b_ih, w_hh, mask, b_hh, alpha, alpha_s,
                    w_fc, b_fc, e_size):
    """x: (T, B, I) f32.  Returns (out (T, B, O), rnn_output (T, B, H))."""
    T, B, I = x.shape
    H = w_ih.shape[0]

    Hp = _round_up(H, 128)          # lane-dense hidden dimension
    Bp = _round_up(B, 8)            # sublane-aligned batch

    # Optional megacore batch split (v7x has 2 TensorCores); each block must
    # stay sublane-aligned.  No-op for small batches / single-TC chips.
    nb = 2 if (Bp >= 16 and Bp % 16 == 0) else 1
    Bb = Bp // nb

    # Time-chunk size: chunk-scaled VMEM (double-buffered x in, rnn_out out,
    # plus the xproj scratch) budgeted at ~24 MiB so the whole kernel stays
    # well under v7x's 64 MiB physical VMEM (and the 16/32 MiB scoped defaults
    # are overridden explicitly below).
    chunk_budget = 24 << 20
    per_step_bytes = 4 * Bb * (2 * I + 3 * Hp)
    Tc = int(max(1, min(T, 256, chunk_budget // max(per_step_bytes, 1))))
    Tp = _round_up(T, Tc)
    nt = Tp // Tc

    # Pad inputs/weights. Padded hidden units have zero weights/bias/alpha and
    # therefore stay exactly zero through the recurrence; padded batch rows and
    # trailing time steps are computed on zeros and discarded.
    xp = jnp.zeros((Tp, Bp, I), jnp.float32).at[:T, :B, :].set(x)
    w_ih_t = jnp.zeros((I, Hp), jnp.float32).at[:, :H].set(w_ih.T)
    w_hh_t = jnp.zeros((Hp, Hp), jnp.float32).at[:H, :H].set(w_hh.T)
    mask_t = jnp.zeros((Hp, Hp), jnp.float32).at[:H, :H].set(mask.T)
    bias = jnp.zeros((1, Hp), jnp.float32).at[0, :H].set(b_ih + b_hh)
    alpha_p = jnp.zeros((1, Hp), jnp.float32).at[:, :H].set(alpha.reshape(1, H))
    alpha_s_p = jnp.zeros((1, Hp), jnp.float32).at[:, :H].set(
        alpha_s.reshape(1, H))

    # VMEM estimate: double-buffered pipelined blocks + resident weights + scratch.
    vmem_bytes = 4 * (2 * Tc * Bb * I + 2 * Tc * Bb * Hp
                      + 2 * (I * Hp + 2 * Hp * Hp + 3 * Hp)
                      + Tc * Bb * Hp + Hp * Hp + 3 * Bb * Hp)
    vmem_limit = int(min(max(vmem_bytes + (4 << 20), 8 << 20), 56 << 20))

    # Full unroll for short chunks, partial unroll otherwise (LLO visibility).
    unroll = True if Tc <= 16 else 4

    rnn_p = pl.pallas_call(
        functools.partial(_aseirnn_kernel, chunk_len=Tc, batch_block=Bb,
                          unroll=unroll),
        out_shape=jax.ShapeDtypeStruct((Tp, Bp, Hp), jnp.float32),
        grid_spec=pltpu.PrefetchScalarGridSpec(
            num_scalar_prefetch=0,
            grid=(nb, nt),
            in_specs=[
                pl.BlockSpec((Tc, Bb, I), lambda b, t: (t, b, 0)),   # x chunk
                pl.BlockSpec((I, Hp), lambda b, t: (0, 0)),          # W_ih^T
                pl.BlockSpec((Hp, Hp), lambda b, t: (0, 0)),         # W_hh^T
                pl.BlockSpec((Hp, Hp), lambda b, t: (0, 0)),         # mask^T
                pl.BlockSpec((1, Hp), lambda b, t: (0, 0)),          # b_ih+b_hh
                pl.BlockSpec((1, Hp), lambda b, t: (0, 0)),          # alpha
                pl.BlockSpec((1, Hp), lambda b, t: (0, 0)),          # alpha_s
            ],
            out_specs=pl.BlockSpec((Tc, Bb, Hp), lambda b, t: (t, b, 0)),
            scratch_shapes=[
                pltpu.VMEM((Tc, Bb, Hp), jnp.float32),   # fused x-projection
                pltpu.VMEM((Hp, Hp), jnp.float32),       # |W_hh|*mask (transposed)
                pltpu.VMEM((Bb, Hp), jnp.float32),       # state   (persists)
                pltpu.VMEM((Bb, Hp), jnp.float32),       # output  (persists)
                pltpu.VMEM((Bb, Hp), jnp.float32),       # synapse (persists)
            ]),
        compiler_params=pltpu.CompilerParams(
            dimension_semantics=("parallel", "arbitrary"),
            vmem_limit_bytes=vmem_limit),
    )(xp, w_ih_t, w_hh_t, mask_t, bias, alpha_p, alpha_s_p)

    rnn_output = rnn_p[:T, :B, :H]
    # Readout done outside the kernel (lane-dense rnn_output is already in HBM;
    # one XLA matmul over the excitatory slice == fc(output[:, :e_size])).
    out = jnp.einsum('tbe,oe->tbo', rnn_output[:, :, :e_size], w_fc) + b_fc
    return out, rnn_output


def aseirnn_reference(x, w_ih, b_ih, w_hh, mask, b_hh, alpha, alpha_s,
                      w_fc, b_fc, e_size):
    """Pure-JAX reference of ASEIRNN.forward (sigma_rec = 0)."""
    T, B, _ = x.shape
    H = w_ih.shape[0]
    eff = jnp.abs(w_hh) * mask
    state = jnp.zeros((B, H), jnp.float32)
    output = jnp.zeros((B, H), jnp.float32)
    syn = jnp.zeros((B, H), jnp.float32)
    outs, rnn_outs = [], []
    for t in range(T):
        total = x[t] @ w_ih.T + b_ih + output @ eff.T + b_hh
        s_new = alpha_s * (total - syn) + syn
        state = alpha * (jnp.tanh(s_new) - state) + state
        output = jnp.tanh(state)
        syn = s_new
        rnn_outs.append(output)
        outs.append(output[:, :e_size] @ w_fc.T + b_fc)
    return jnp.stack(outs, 0), jnp.stack(rnn_outs, 0)


if __name__ == "__main__":
    # Small shapes consistent with the module: input is (seq_len, batch, input_size).
    T, B = 8, 8
    input_size, hidden_size, output_size = 16, 32, 4
    e_prop = 0.8
    e_size = int(e_prop * hidden_size)          # 25 excitatory units

    key = jax.random.PRNGKey(0)
    kx, k_wih, k_bih, k_whh, k_bhh, k_wfc, k_bfc, k_alpha = jax.random.split(key, 8)

    x = jax.random.normal(kx, (T, B, input_size), dtype=jnp.float32)

    bih_bound = 1.0 / (input_size ** 0.5)
    bhh_bound = 1.0 / (hidden_size ** 0.5)
    bfc_bound = 1.0 / (e_size ** 0.5)
    w_ih = jax.random.uniform(k_wih, (hidden_size, input_size),
                              minval=-bih_bound, maxval=bih_bound, dtype=jnp.float32)
    b_ih = jax.random.uniform(k_bih, (hidden_size,),
                              minval=-bih_bound, maxval=bih_bound, dtype=jnp.float32)
    w_hh = jax.random.uniform(k_whh, (hidden_size, hidden_size),
                              minval=-bhh_bound, maxval=bhh_bound, dtype=jnp.float32)
    b_hh = jax.random.uniform(k_bhh, (hidden_size,),
                              minval=-bhh_bound, maxval=bhh_bound, dtype=jnp.float32)
    w_fc = jax.random.uniform(k_wfc, (output_size, e_size),
                              minval=-bfc_bound, maxval=bfc_bound, dtype=jnp.float32)
    b_fc = jax.random.uniform(k_bfc, (output_size,),
                              minval=-bfc_bound, maxval=bfc_bound, dtype=jnp.float32)

    # E/I mask: every row is [+1]*e_size + [-1]*i_size with a zero diagonal.
    i_size = hidden_size - e_size
    sign_row = jnp.concatenate([jnp.ones((e_size,), jnp.float32),
                                -jnp.ones((i_size,), jnp.float32)])
    mask = jnp.tile(sign_row, (hidden_size, 1)) * (1.0 - jnp.eye(hidden_size,
                                                                 dtype=jnp.float32))

    # Per-neuron adaptive time constants drawn from a discrete set (AEIRNN init);
    # ASEIRNN clones alpha into alpha_s.
    unique_alphas = jnp.array([0.2, 0.5, 1.0], jnp.float32)
    alpha_idx = jax.random.randint(k_alpha, (1, hidden_size), 0,
                                   unique_alphas.shape[0])
    alpha = unique_alphas[alpha_idx]            # (1, H)
    alpha_s = alpha

    fwd = jax.jit(aseirnn_forward, static_argnums=(10,))
    out, rnn_output = fwd(x, w_ih, b_ih, w_hh, mask, b_hh, alpha, alpha_s,
                          w_fc, b_fc, e_size)
    jax.block_until_ready((out, rnn_output))

    ref_out, ref_rnn = aseirnn_reference(x, w_ih, b_ih, w_hh, mask, b_hh,
                                         alpha, alpha_s, w_fc, b_fc, e_size)

    assert out.shape == (T, B, output_size)
    assert rnn_output.shape == (T, B, hidden_size)
    assert jnp.allclose(out, ref_out, atol=1e-5, rtol=1e-5)
    assert jnp.allclose(rnn_output, ref_rnn, atol=1e-5, rtol=1e-5)

    print("KERNEL_OK")
</pallas_src>

<mosaic_0001>
module attributes {stable_mosaic.version = 11 : i64} {
  func.func @_aseirnn_kernel(%arg0: i32, %arg1: i32, %arg2: memref<8x8x16xf32, #tpu.memory_space<vmem>>, %arg3: memref<16x128xf32, #tpu.memory_space<vmem>>, %arg4: memref<128x128xf32, #tpu.memory_space<vmem>>, %arg5: memref<128x128xf32, #tpu.memory_space<vmem>>, %arg6: memref<1x128xf32, #tpu.memory_space<vmem>>, %arg7: memref<1x128xf32, #tpu.memory_space<vmem>>, %arg8: memref<1x128xf32, #tpu.memory_space<vmem>>, %arg9: memref<8x8x128xf32, #tpu.memory_space<vmem>>, %arg10: memref<8x8x128xf32, #tpu.memory_space<vmem>>, %arg11: memref<128x128xf32, #tpu.memory_space<vmem>>, %arg12: memref<8x128xf32, #tpu.memory_space<vmem>>, %arg13: memref<8x128xf32, #tpu.memory_space<vmem>>, %arg14: memref<8x128xf32, #tpu.memory_space<vmem>>) attributes {dimension_semantics = [#tpu.dimension_semantics<parallel>, #tpu.dimension_semantics<arbitrary>], iteration_bounds = array<i64: 1, 1>, scalar_prefetch = 0 : i64, scratch_operands = 5 : i64, tpu.core_type = #tpu.core_type<tc>, window_params = [{transform_indices = @transform_0, window_bounds = array<i64: 8, 8, 16>}, {pipeline_mode = #tpu.pipeline_mode<synchronous>, transform_indices = @transform_1, window_bounds = array<i64: 16, 128>}, {pipeline_mode = #tpu.pipeline_mode<synchronous>, transform_indices = @transform_2, window_bounds = array<i64: 128, 128>}, {pipeline_mode = #tpu.pipeline_mode<synchronous>, transform_indices = @transform_3, window_bounds = array<i64: 128, 128>}, {pipeline_mode = #tpu.pipeline_mode<synchronous>, transform_indices = @transform_4, window_bounds = array<i64: 1, 128>}, {pipeline_mode = #tpu.pipeline_mode<synchronous>, transform_indices = @transform_5, window_bounds = array<i64: 1, 128>}, {pipeline_mode = #tpu.pipeline_mode<synchronous>, transform_indices = @transform_6, window_bounds = array<i64: 1, 128>}, {transform_indices = @transform_7, window_bounds = array<i64: 8, 8, 128>}]} {
    %c0_i32 = arith.constant 0 : i32
    %0 = arith.cmpi eq, %arg1, %c0_i32 : i32
    %1 = arith.extui %0 : i1 to i32
    %c0_i32_0 = arith.constant 0 : i32
    %2 = arith.cmpi ne, %1, %c0_i32_0 : i32
    scf.if %2 {
      %c0_83 = arith.constant 0 : index
      %c0_84 = arith.constant 0 : index
      %194 = vector.load %arg4[%c0_83, %c0_84] : memref<128x128xf32, #tpu.memory_space<vmem>>, vector<128x128xf32>
      %195 = math.absf %194 : vector<128x128xf32>
      %c0_85 = arith.constant 0 : index
      %c0_86 = arith.constant 0 : index
      %196 = vector.load %arg5[%c0_85, %c0_86] : memref<128x128xf32, #tpu.memory_space<vmem>>, vector<128x128xf32>
      %197 = arith.mulf %195, %196 : vector<128x128xf32>
      %c0_87 = arith.constant 0 : index
      %c0_88 = arith.constant 0 : index
      %198 = vector.load %arg11[%c0_87, %c0_88] : memref<128x128xf32, #tpu.memory_space<vmem>>, vector<128x128xf32>
      tpu.vector_store %arg11[%c0_87, %c0_88], %197 {strides = array<i32>} : memref<128x128xf32, #tpu.memory_space<vmem>>, vector<128x128xf32>,
      %cst_89 = arith.constant 0.000000e+00 : f32
      %199 = vector.broadcast %cst_89 : f32 to vector<8x128xf32>
      %c0_90 = arith.constant 0 : index
      %c0_91 = arith.constant 0 : index
      %200 = vector.load %arg12[%c0_90, %c0_91] : memref<8x128xf32, #tpu.memory_space<vmem>>, vector<8x128xf32>
      tpu.vector_store %arg12[%c0_90, %c0_91], %199 {strides = array<i32>} : memref<8x128xf32, #tpu.memory_space<vmem>>, vector<8x128xf32>,
      %cst_92 = arith.constant 0.000000e+00 : f32
      %201 = vector.broadcast %cst_92 : f32 to vector<8x128xf32>
      %c0_93 = arith.constant 0 : index
      %c0_94 = arith.constant 0 : index
      %202 = vector.load %arg13[%c0_93, %c0_94] : memref<8x128xf32, #tpu.memory_space<vmem>>, vector<8x128xf32>
      tpu.vector_store %arg13[%c0_93, %c0_94], %201 {strides = array<i32>} : memref<8x128xf32, #tpu.memory_space<vmem>>, vector<8x128xf32>,
      %cst_95 = arith.constant 0.000000e+00 : f32
      %203 = vector.broadcast %cst_95 : f32 to vector<8x128xf32>
      %c0_96 = arith.constant 0 : index
      %c0_97 = arith.constant 0 : index
      %204 = vector.load %arg14[%c0_96, %c0_97] : memref<8x128xf32, #tpu.memory_space<vmem>>, vector<8x128xf32>
      tpu.vector_store %arg14[%c0_96, %c0_97], %203 {strides = array<i32>} : memref<8x128xf32, #tpu.memory_space<vmem>>, vector<8x128xf32>,
    } else {
    }
    %c0 = arith.constant 0 : index
    %c0_1 = arith.constant 0 : index
    %c0_2 = arith.constant 0 : index
    %3 = vector.load %arg2[%c0, %c0_1, %c0_2] : memref<8x8x16xf32, #tpu.memory_space<vmem>>, vector<8x8x16xf32>
    %4 = vector.shape_cast %3 : vector<8x8x16xf32> to vector<64x16xf32>
    %c0_3 = arith.constant 0 : index
    %c0_4 = arith.constant 0 : index
    %5 = vector.load %arg3[%c0_3, %c0_4] : memref<16x128xf32, #tpu.memory_space<vmem>>, vector<16x128xf32>
    %cst = arith.constant dense<0.000000e+00> : vector<64x128xf32>
    %6 = tpu.matmul %4, %5, %cst {dimension_numbers = #tpu.dot_dimension_numbers<[1], [0], [0], [1], [0, 0, 1, 1], [], []>} : vector<64x16xf32>, vector<16x128xf32>, vector<64x128xf32> -> vector<64x128xf32>
    %7 = vector.shape_cast %6 : vector<64x128xf32> to vector<8x8x128xf32>
    %c0_5 = arith.constant 0 : index
    %c0_6 = arith.constant 0 : index
    %c0_7 = arith.constant 0 : index
    %8 = vector.load %arg10[%c0_5, %c0_6, %c0_7] : memref<8x8x128xf32, #tpu.memory_space<vmem>>, vector<8x8x128xf32>
    tpu.vector_store %arg10[%c0_5, %c0_6, %c0_7], %7 {strides = array<i32>} : memref<8x8x128xf32, #tpu.memory_space<vmem>>, vector<8x8x128xf32>,
    %c0_8 = arith.constant 0 : index
    %c0_9 = arith.constant 0 : index
    %9 = vector.load %arg6[%c0_8, %c0_9] : memref<1x128xf32, #tpu.memory_space<vmem>>, vector<1x128xf32>
    %c0_10 = arith.constant 0 : index
    %c0_11 = arith.constant 0 : index
    %10 = vector.load %arg7[%c0_10, %c0_11] : memref<1x128xf32, #tpu.memory_space<vmem>>, vector<1x128xf32>
    %c0_12 = arith.constant 0 : index
    %c0_13 = arith.constant 0 : index
    %11 = vector.load %arg8[%c0_12, %c0_13] : memref<1x128xf32, #tpu.memory_space<vmem>>, vector<1x128xf32>
    %c0_14 = arith.constant 0 : index
    %c0_15 = arith.constant 0 : index
    %12 = vector.load %arg12[%c0_14, %c0_15] : memref<8x128xf32, #tpu.memory_space<vmem>>, vector<8x128xf32>
    %c0_16 = arith.constant 0 : index
    %c0_17 = arith.constant 0 : index
    %13 = vector.load %arg13[%c0_16, %c0_17] : memref<8x128xf32, #tpu.memory_space<vmem>>, vector<8x128xf32>
    %c0_18 = arith.constant 0 : index
    %c0_19 = arith.constant 0 : index
    %14 = vector.load %arg14[%c0_18, %c0_19] : memref<8x128xf32, #tpu.memory_space<vmem>>, vector<8x128xf32>
    %c0_i32_20 = arith.constant 0 : i32
    %c0_21 = arith.constant 0 : index
    %c0_22 = arith.constant 0 : index
    %15 = vector.load %arg11[%c0_21, %c0_22] : memref<128x128xf32, #tpu.memory_space<vmem>>, vector<128x128xf32>
    %cst_23 = arith.constant dense<0.000000e+00> : vector<8x128xf32>
    %16 = tpu.matmul %13, %15, %cst_23 {dimension_numbers = #tpu.dot_dimension_numbers<[1], [0], [0], [1], [0, 0, 1, 1], [], []>} : vector<8x128xf32>, vector<128x128xf32>, vector<8x128xf32> -> vector<8x128xf32>
    %17 = arith.index_cast %c0_i32_20 : i32 to index
    %c0_24 = arith.constant 0 : index
    %c0_25 = arith.constant 0 : index
    %18 = vector.load %arg10[%17, %c0_24, %c0_25] : memref<8x8x128xf32, #tpu.memory_space<vmem>>, vector<1x8x128xf32>
    %19 = vector.shape_cast %18 : vector<1x8x128xf32> to vector<8x128xf32>
    %20 = arith.addf %19, %16 : vector<8x128xf32>
    %21 = vector.broadcast %9 : vector<1x128xf32> to vector<8x128xf32>
    %22 = arith.addf %20, %21 : vector<8x128xf32>
    %23 = arith.subf %22, %14 : vector<8x128xf32>
    %24 = vector.broadcast %11 : vector<1x128xf32> to vector<8x128xf32>
    %25 = arith.mulf %24, %23 : vector<8x128xf32>
    %26 = arith.addf %25, %14 : vector<8x128xf32>
    %27 = math.tanh %26 : vector<8x128xf32>
    %28 = arith.subf %27, %12 : vector<8x128xf32>
    %29 = vector.broadcast %10 : vector<1x128xf32> to vector<8x128xf32>
    %30 = arith.mulf %29, %28 : vector<8x128xf32>
    %31 = arith.addf %30, %12 : vector<8x128xf32>
    %32 = math.tanh %31 : vector<8x128xf32>
    %33 = arith.index_cast %c0_i32_20 : i32 to index
    %c0_26 = arith.constant 0 : index
    %c0_27 = arith.constant 0 : index
    %34 = vector.load %arg9[%33, %c0_26, %c0_27] : memref<8x8x128xf32, #tpu.memory_space<vmem>>, vector<1x8x128xf32>
    %35 = vector.shape_cast %34 : vector<1x8x128xf32> to vector<8x128xf32>
    %36 = vector.shape_cast %32 : vector<8x128xf32> to vector<1x8x128xf32>
    tpu.vector_store %arg9[%33, %c0_26, %c0_27], %36 {strides = array<i32>} : memref<8x8x128xf32, #tpu.memory_space<vmem>>, vector<1x8x128xf32>,
    %c1_i32 = arith.constant 1 : i32
    %c0_28 = arith.constant 0 : index
    %c0_29 = arith.constant 0 : index
    %37 = vector.load %arg11[%c0_28, %c0_29] : memref<128x128xf32, #tpu.memory_space<vmem>>, vector<128x128xf32>
    %cst_30 = arith.constant dense<0.000000e+00> : vector<8x128xf32>
    %38 = tpu.matmul %32, %37, %cst_30 {dimension_numbers = #tpu.dot_dimension_numbers<[1], [0], [0], [1], [0, 0, 1, 1], [], []>} : vector<8x128xf32>, vector<128x128xf32>, vector<8x128xf32> -> vector<8x128xf32>
    %39 = arith.index_cast %c1_i32 : i32 to index
    %c0_31 = arith.constant 0 : index
    %c0_32 = arith.constant 0 : index
    %40 = vector.load %arg10[%39, %c0_31, %c0_32] : memref<8x8x128xf32, #tpu.memory_space<vmem>>, vector<1x8x128xf32>
    %41 = vector.shape_cast %40 : vector<1x8x128xf32> to vector<8x128xf32>
    %42 = arith.addf %41, %38 : vector<8x128xf32>
    %43 = vector.broadcast %9 : vector<1x128xf32> to vector<8x128xf32>
    %44 = arith.addf %42, %43 : vector<8x128xf32>
    %45 = arith.subf %44, %26 : vector<8x128xf32>
    %46 = vector.broadcast %11 : vector<1x128xf32> to vector<8x128xf32>
    %47 = arith.mulf %46, %45 : vector<8x128xf32>
    %48 = arith.addf %47, %26 : vector<8x128xf32>
    %49 = math.tanh %48 : vector<8x128xf32>
    %50 = arith.subf %49, %31 : vector<8x128xf32>
    %51 = vector.broadcast %10 : vector<1x128xf32> to vector<8x128xf32>
    %52 = arith.mulf %51, %50 : vector<8x128xf32>
    %53 = arith.addf %52, %31 : vector<8x128xf32>
    %54 = math.tanh %53 : vector<8x128xf32>
    %55 = arith.index_cast %c1_i32 : i32 to index
    %c0_33 = arith.constant 0 : index
    %c0_34 = arith.constant 0 : index
    %56 = vector.load %arg9[%55, %c0_33, %c0_34] : memref<8x8x128xf32, #tpu.memory_space<vmem>>, vector<1x8x128xf32>
    %57 = vector.shape_cast %56 : vector<1x8x128xf32> to vector<8x128xf32>
    %58 = vector.shape_cast %54 : vector<8x128xf32> to vector<1x8x128xf32>
    tpu.vector_store %arg9[%55, %c0_33, %c0_34], %58 {strides = array<i32>} : memref<8x8x128xf32, #tpu.memory_space<vmem>>, vector<1x8x128xf32>,
    %c2_i32 = arith.constant 2 : i32
    %c0_35 = arith.constant 0 : index
    %c0_36 = arith.constant 0 : index
    %59 = vector.load %arg11[%c0_35, %c0_36] : memref<128x128xf32, #tpu.memory_space<vmem>>, vector<128x128xf32>
    %cst_37 = arith.constant dense<0.000000e+00> : vector<8x128xf32>
    %60 = tpu.matmul %54, %59, %cst_37 {dimension_numbers = #tpu.dot_dimension_numbers<[1], [0], [0], [1], [0, 0, 1, 1], [], []>} : vector<8x128xf32>, vector<128x128xf32>, vector<8x128xf32> -> vector<8x128xf32>
    %61 = arith.index_cast %c2_i32 : i32 to index
    %c0_38 = arith.constant 0 : index
    %c0_39 = arith.constant 0 : index
    %62 = vector.load %arg10[%61, %c0_38, %c0_39] : memref<8x8x128xf32, #tpu.memory_space<vmem>>, vector<1x8x128xf32>
    %63 = vector.shape_cast %62 : vector<1x8x128xf32> to vector<8x128xf32>
    %64 = arith.addf %63, %60 : vector<8x128xf32>
    %65 = vector.broadcast %9 : vector<1x128xf32> to vector<8x128xf32>
    %66 = arith.addf %64, %65 : vector<8x128xf32>
    %67 = arith.subf %66, %48 : vector<8x128xf32>
    %68 = vector.broadcast %11 : vector<1x128xf32> to vector<8x128xf32>
    %69 = arith.mulf %68, %67 : vector<8x128xf32>
    %70 = arith.addf %69, %48 : vector<8x128xf32>
    %71 = math.tanh %70 : vector<8x128xf32>
    %72 = arith.subf %71, %53 : vector<8x128xf32>
    %73 = vector.broadcast %10 : vector<1x128xf32> to vector<8x128xf32>
    %74 = arith.mulf %73, %72 : vector<8x128xf32>
    %75 = arith.addf %74, %53 : vector<8x128xf32>
    %76 = math.tanh %75 : vector<8x128xf32>
    %77 = arith.index_cast %c2_i32 : i32 to index
    %c0_40 = arith.constant 0 : index
    %c0_41 = arith.constant 0 : index
    %78 = vector.load %arg9[%77, %c0_40, %c0_41] : memref<8x8x128xf32, #tpu.memory_space<vmem>>, vector<1x8x128xf32>
    %79 = vector.shape_cast %78 : vector<1x8x128xf32> to vector<8x128xf32>
    %80 = vector.shape_cast %76 : vector<8x128xf32> to vector<1x8x128xf32>
    tpu.vector_store %arg9[%77, %c0_40, %c0_41], %80 {strides = array<i32>} : memref<8x8x128xf32, #tpu.memory_space<vmem>>, vector<1x8x128xf32>,
    %c3_i32 = arith.constant 3 : i32
    %c0_42 = arith.constant 0 : index
    %c0_43 = arith.constant 0 : index
    %81 = vector.load %arg11[%c0_42, %c0_43] : memref<128x128xf32, #tpu.memory_space<vmem>>, vector<128x128xf32>
    %cst_44 = arith.constant dense<0.000000e+00> : vector<8x128xf32>
    %82 = tpu.matmul %76, %81, %cst_44 {dimension_numbers = #tpu.dot_dimension_numbers<[1], [0], [0], [1], [0, 0, 1, 1], [], []>} : vector<8x128xf32>, vector<128x128xf32>, vector<8x128xf32> -> vector<8x128xf32>
    %83 = arith.index_cast %c3_i32 : i32 to index
    %c0_45 = arith.constant 0 : index
    %c0_46 = arith.constant 0 : index
    %84 = vector.load %arg10[%83, %c0_45, %c0_46] : memref<8x8x128xf32, #tpu.memory_space<vmem>>, vector<1x8x128xf32>
    %85 = vector.shape_cast %84 : vector<1x8x128xf32> to vector<8x128xf32>
    %86 = arith.addf %85, %82 : vector<8x128xf32>
    %87 = vector.broadcast %9 : vector<1x128xf32> to vector<8x128xf32>
    %88 = arith.addf %86, %87 : vector<8x128xf32>
    %89 = arith.subf %88, %70 : vector<8x128xf32>
    %90 = vector.broadcast %11 : vector<1x128xf32> to vector<8x128xf32>
    %91 = arith.mulf %90, %89 : vector<8x128xf32>
    %92 = arith.addf %91, %70 : vector<8x128xf32>
    %93 = math.tanh %92 : vector<8x128xf32>
    %94 = arith.subf %93, %75 : vector<8x128xf32>
    %95 = vector.broadcast %10 : vector<1x128xf32> to vector<8x128xf32>
    %96 = arith.mulf %95, %94 : vector<8x128xf32>
    %97 = arith.addf %96, %75 : vector<8x128xf32>
    %98 = math.tanh %97 : vector<8x128xf32>
    %99 = arith.index_cast %c3_i32 : i32 to index
    %c0_47 = arith.constant 0 : index
    %c0_48 = arith.constant 0 : index
    %100 = vector.load %arg9[%99, %c0_47, %c0_48] : memref<8x8x128xf32, #tpu.memory_space<vmem>>, vector<1x8x128xf32>
    %101 = vector.shape_cast %100 : vector<1x8x128xf32> to vector<8x128xf32>
    %102 = vector.shape_cast %98 : vector<8x128xf32> to vector<1x8x128xf32>
    tpu.vector_store %arg9[%99, %c0_47, %c0_48], %102 {strides = array<i32>} : memref<8x8x128xf32, #tpu.memory_space<vmem>>, vector<1x8x128xf32>,
    %c4_i32 = arith.constant 4 : i32
    %c0_49 = arith.constant 0 : index
    %c0_50 = arith.constant 0 : index
    %103 = vector.load %arg11[%c0_49, %c0_50] : memref<128x128xf32, #tpu.memory_space<vmem>>, vector<128x128xf32>
    %cst_51 = arith.constant dense<0.000000e+00> : vector<8x128xf32>
    %104 = tpu.matmul %98, %103, %cst_51 {dimension_numbers = #tpu.dot_dimension_numbers<[1], [0], [0], [1], [0, 0, 1, 1], [], []>} : vector<8x128xf32>, vector<128x128xf32>, vector<8x128xf32> -> vector<8x128xf32>
    %105 = arith.index_cast %c4_i32 : i32 to index
    %c0_52 = arith.constant 0 : index
    %c0_53 = arith.constant 0 : index
    %106 = vector.load %arg10[%105, %c0_52, %c0_53] : memref<8x8x128xf32, #tpu.memory_space<vmem>>, vector<1x8x128xf32>
    %107 = vector.shape_cast %106 : vector<1x8x128xf32> to vector<8x128xf32>
    %108 = arith.addf %107, %104 : vector<8x128xf32>
    %109 = vector.broadcast %9 : vector<1x128xf32> to vector<8x128xf32>
    %110 = arith.addf %108, %109 : vector<8x128xf32>
    %111 = arith.subf %110, %92 : vector<8x128xf32>
    %112 = vector.broadcast %11 : vector<1x128xf32> to vector<8x128xf32>
    %113 = arith.mulf %112, %111 : vector<8x128xf32>
    %114 = arith.addf %113, %92 : vector<8x128xf32>
    %115 = math.tanh %114 : vector<8x128xf32>
    %116 = arith.subf %115, %97 : vector<8x128xf32>
    %117 = vector.broadcast %10 : vector<1x128xf32> to vector<8x128xf32>
    %118 = arith.mulf %117, %116 : vector<8x128xf32>
    %119 = arith.addf %118, %97 : vector<8x128xf32>
    %120 = math.tanh %119 : vector<8x128xf32>
    %121 = arith.index_cast %c4_i32 : i32 to index
    %c0_54 = arith.constant 0 : index
    %c0_55 = arith.constant 0 : index
    %122 = vector.load %arg9[%121, %c0_54, %c0_55] : memref<8x8x128xf32, #tpu.memory_space<vmem>>, vector<1x8x128xf32>
    %123 = vector.shape_cast %122 : vector<1x8x128xf32> to vector<8x128xf32>
    %124 = vector.shape_cast %120 : vector<8x128xf32> to vector<1x8x128xf32>
    tpu.vector_store %arg9[%121, %c0_54, %c0_55], %124 {strides = array<i32>} : memref<8x8x128xf32, #tpu.memory_space<vmem>>, vector<1x8x128xf32>,
    %c5_i32 = arith.constant 5 : i32
    %c0_56 = arith.constant 0 : index
    %c0_57 = arith.constant 0 : index
    %125 = vector.load %arg11[%c0_56, %c0_57] : memref<128x128xf32, #tpu.memory_space<vmem>>, vector<128x128xf32>
    %cst_58 = arith.constant dense<0.000000e+00> : vector<8x128xf32>
    %126 = tpu.matmul %120, %125, %cst_58 {dimension_numbers = #tpu.dot_dimension_numbers<[1], [0], [0], [1], [0, 0, 1, 1], [], []>} : vector<8x128xf32>, vector<128x128xf32>, vector<8x128xf32> -> vector<8x128xf32>
    %127 = arith.index_cast %c5_i32 : i32 to index
    %c0_59 = arith.constant 0 : index
    %c0_60 = arith.constant 0 : index
    %128 = vector.load %arg10[%127, %c0_59, %c0_60] : memref<8x8x128xf32, #tpu.memory_space<vmem>>, vector<1x8x128xf32>
    %129 = vector.shape_cast %128 : vector<1x8x128xf32> to vector<8x128xf32>
    %130 = arith.addf %129, %126 : vector<8x128xf32>
    %131 = vector.broadcast %9 : vector<1x128xf32> to vector<8x128xf32>
    %132 = arith.addf %130, %131 : vector<8x128xf32>
    %133 = arith.subf %132, %114 : vector<8x128xf32>
    %134 = vector.broadcast %11 : vector<1x128xf32> to vector<8x128xf32>
    %135 = arith.mulf %134, %133 : vector<8x128xf32>
    %136 = arith.addf %135, %114 : vector<8x128xf32>
    %137 = math.tanh %136 : vector<8x128xf32>
    %138 = arith.subf %137, %119 : vector<8x128xf32>
    %139 = vector.broadcast %10 : vector<1x128xf32> to vector<8x128xf32>
    %140 = arith.mulf %139, %138 : vector<8x128xf32>
    %141 = arith.addf %140, %119 : vector<8x128xf32>
    %142 = math.tanh %141 : vector<8x128xf32>
    %143 = arith.index_cast %c5_i32 : i32 to index
    %c0_61 = arith.constant 0 : index
    %c0_62 = arith.constant 0 : index
    %144 = vector.load %arg9[%143, %c0_61, %c0_62] : memref<8x8x128xf32, #tpu.memory_space<vmem>>, vector<1x8x128xf32>
    %145 = vector.shape_cast %144 : vector<1x8x128xf32> to vector<8x128xf32>
    %146 = vector.shape_cast %142 : vector<8x128xf32> to vector<1x8x128xf32>
    tpu.vector_store %arg9[%143, %c0_61, %c0_62], %146 {strides = array<i32>} : memref<8x8x128xf32, #tpu.memory_space<vmem>>, vector<1x8x128xf32>,
    %c6_i32 = arith.constant 6 : i32
    %c0_63 = arith.constant 0 : index
    %c0_64 = arith.constant 0 : index
    %147 = vector.load %arg11[%c0_63, %c0_64] : memref<128x128xf32, #tpu.memory_space<vmem>>, vector<128x128xf32>
    %cst_65 = arith.constant dense<0.000000e+00> : vector<8x128xf32>
    %148 = tpu.matmul %142, %147, %cst_65 {dimension_numbers = #tpu.dot_dimension_numbers<[1], [0], [0], [1], [0, 0, 1, 1], [], []>} : vector<8x128xf32>, vector<128x128xf32>, vector<8x128xf32> -> vector<8x128xf32>
    %149 = arith.index_cast %c6_i32 : i32 to index
    %c0_66 = arith.constant 0 : index
    %c0_67 = arith.constant 0 : index
    %150 = vector.load %arg10[%149, %c0_66, %c0_67] : memref<8x8x128xf32, #tpu.memory_space<vmem>>, vector<1x8x128xf32>
    %151 = vector.shape_cast %150 : vector<1x8x128xf32> to vector<8x128xf32>
    %152 = arith.addf %151, %148 : vector<8x128xf32>
    %153 = vector.broadcast %9 : vector<1x128xf32> to vector<8x128xf32>
    %154 = arith.addf %152, %153 : vector<8x128xf32>
    %155 = arith.subf %154, %136 : vector<8x128xf32>
    %156 = vector.broadcast %11 : vector<1x128xf32> to vector<8x128xf32>
    %157 = arith.mulf %156, %155 : vector<8x128xf32>
    %158 = arith.addf %157, %136 : vector<8x128xf32>
    %159 = math.tanh %158 : vector<8x128xf32>
    %160 = arith.subf %159, %141 : vector<8x128xf32>
    %161 = vector.broadcast %10 : vector<1x128xf32> to vector<8x128xf32>
    %162 = arith.mulf %161, %160 : vector<8x128xf32>
    %163 = arith.addf %162, %141 : vector<8x128xf32>
    %164 = math.tanh %163 : vector<8x128xf32>
    %165 = arith.index_cast %c6_i32 : i32 to index
    %c0_68 = arith.constant 0 : index
    %c0_69 = arith.constant 0 : index
    %166 = vector.load %arg9[%165, %c0_68, %c0_69] : memref<8x8x128xf32, #tpu.memory_space<vmem>>, vector<1x8x128xf32>
    %167 = vector.shape_cast %166 : vector<1x8x128xf32> to vector<8x128xf32>
    %168 = vector.shape_cast %164 : vector<8x128xf32> to vector<1x8x128xf32>
    tpu.vector_store %arg9[%165, %c0_68, %c0_69], %168 {strides = array<i32>} : memref<8x8x128xf32, #tpu.memory_space<vmem>>, vector<1x8x128xf32>,
    %c7_i32 = arith.constant 7 : i32
    %c0_70 = arith.constant 0 : index
    %c0_71 = arith.constant 0 : index
    %169 = vector.load %arg11[%c0_70, %c0_71] : memref<128x128xf32, #tpu.memory_space<vmem>>, vector<128x128xf32>
    %cst_72 = arith.constant dense<0.000000e+00> : vector<8x128xf32>
    %170 = tpu.matmul %164, %169, %cst_72 {dimension_numbers = #tpu.dot_dimension_numbers<[1], [0], [0], [1], [0, 0, 1, 1], [], []>} : vector<8x128xf32>, vector<128x128xf32>, vector<8x128xf32> -> vector<8x128xf32>
    %171 = arith.index_cast %c7_i32 : i32 to index
    %c0_73 = arith.constant 0 : index
    %c0_74 = arith.constant 0 : index
    %172 = vector.load %arg10[%171, %c0_73, %c0_74] : memref<8x8x128xf32, #tpu.memory_space<vmem>>, vector<1x8x128xf32>
    %173 = vector.shape_cast %172 : vector<1x8x128xf32> to vector<8x128xf32>
    %174 = arith.addf %173, %170 : vector<8x128xf32>
    %175 = vector.broadcast %9 : vector<1x128xf32> to vector<8x128xf32>
    %176 = arith.addf %174, %175 : vector<8x128xf32>
    %177 = arith.subf %176, %158 : vector<8x128xf32>
    %178 = vector.broadcast %11 : vector<1x128xf32> to vector<8x128xf32>
    %179 = arith.mulf %178, %177 : vector<8x128xf32>
    %180 = arith.addf %179, %158 : vector<8x128xf32>
    %181 = math.tanh %180 : vector<8x128xf32>
    %182 = arith.subf %181, %163 : vector<8x128xf32>
    %183 = vector.broadcast %10 : vector<1x128xf32> to vector<8x128xf32>
    %184 = arith.mulf %183, %182 : vector<8x128xf32>
    %185 = arith.addf %184, %163 : vector<8x128xf32>
    %186 = math.tanh %185 : vector<8x128xf32>
    %187 = arith.index_cast %c7_i32 : i32 to index
    %c0_75 = arith.constant 0 : index
    %c0_76 = arith.constant 0 : index
    %188 = vector.load %arg9[%187, %c0_75, %c0_76] : memref<8x8x128xf32, #tpu.memory_space<vmem>>, vector<1x8x128xf32>
    %189 = vector.shape_cast %188 : vector<1x8x128xf32> to vector<8x128xf32>
    %190 = vector.shape_cast %186 : vector<8x128xf32> to vector<1x8x128xf32>
    tpu.vector_store %arg9[%187, %c0_75, %c0_76], %190 {strides = array<i32>} : memref<8x8x128xf32, #tpu.memory_space<vmem>>, vector<1x8x128xf32>,
    %c8_i32 = arith.constant 8 : i32
    %c0_77 = arith.constant 0 : index
    %c0_78 = arith.constant 0 : index
    %191 = vector.load %arg12[%c0_77, %c0_78] : memref<8x128xf32, #tpu.memory_space<vmem>>, vector<8x128xf32>
    tpu.vector_store %arg12[%c0_77, %c0_78], %185 {strides = array<i32>} : memref<8x128xf32, #tpu.memory_space<vmem>>, vector<8x128xf32>,
    %c0_79 = arith.constant 0 : index
    %c0_80 = arith.constant 0 : index
    %192 = vector.load %arg13[%c0_79, %c0_80] : memref<8x128xf32, #tpu.memory_space<vmem>>, vector<8x128xf32>
    tpu.vector_store %arg13[%c0_79, %c0_80], %186 {strides = array<i32>} : memref<8x128xf32, #tpu.memory_space<vmem>>, vector<8x128xf32>,
    %c0_81 = arith.constant 0 : index
    %c0_82 = arith.constant 0 : index
    %193 = vector.load %arg14[%c0_81, %c0_82] : memref<8x128xf32, #tpu.memory_space<vmem>>, vector<8x128xf32>
    tpu.vector_store %arg14[%c0_81, %c0_82], %180 {strides = array<i32>} : memref<8x128xf32, #tpu.memory_space<vmem>>, vector<8x128xf32>,
    return
  }
  func.func @transform_0(%arg0: i32, %arg1: i32) -> (i32, i32, i32) {
    %c0_i32 = arith.constant 0 : i32
    %c0_i32_0 = arith.constant 0 : i32
    return %arg1, %arg0, %c0_i32 : i32, i32, i32
  }
  func.func @transform_1(%arg0: i32, %arg1: i32) -> (i32, i32) {
    %c0_i32 = arith.constant 0 : i32
    %c0_i32_0 = arith.constant 0 : i32
    %c0_i32_1 = arith.constant 0 : i32
    return %c0_i32, %c0_i32_0 : i32, i32
  }
  func.func @transform_2(%arg0: i32, %arg1: i32) -> (i32, i32) {
    %c0_i32 = arith.constant 0 : i32
    %c0_i32_0 = arith.constant 0 : i32
    %c0_i32_1 = arith.constant 0 : i32
    return %c0_i32, %c0_i32_0 : i32, i32
  }
  func.func @transform_3(%arg0: i32, %arg1: i32) -> (i32, i32) {
    %c0_i32 = arith.constant 0 : i32
    %c0_i32_0 = arith.constant 0 : i32
    %c0_i32_1 = arith.constant 0 : i32
    return %c0_i32, %c0_i32_0 : i32, i32
  }
  func.func @transform_4(%arg0: i32, %arg1: i32) -> (i32, i32) {
    %c0_i32 = arith.constant 0 : i32
    %c0_i32_0 = arith.constant 0 : i32
    %c0_i32_1 = arith.constant 0 : i32
    return %c0_i32, %c0_i32_0 : i32, i32
  }
  func.func @transform_5(%arg0: i32, %arg1: i32) -> (i32, i32) {
    %c0_i32 = arith.constant 0 : i32
    %c0_i32_0 = arith.constant 0 : i32
    %c0_i32_1 = arith.constant 0 : i32
    return %c0_i32, %c0_i32_0 : i32, i32
  }
  func.func @transform_6(%arg0: i32, %arg1: i32) -> (i32, i32) {
    %c0_i32 = arith.constant 0 : i32
    %c0_i32_0 = arith.constant 0 : i32
    %c0_i32_1 = arith.constant 0 : i32
    return %c0_i32, %c0_i32_0 : i32, i32
  }
  func.func @transform_7(%arg0: i32, %arg1: i32) -> (i32, i32, i32) {
    %c0_i32 = arith.constant 0 : i32
    %c0_i32_0 = arith.constant 0 : i32
    return %arg1, %arg0, %c0_i32 : i32, i32, i32
  }
}

</mosaic_0001>

<bundles_post_ra>
// kernel: aseirnn_forward.1
= control target key start
LH: loop header
LB: loop body
LE: loop exit
PB: predicated region body
PF: predicated region fallthrough
CT: control target
= control target key end

     0   :  { %v1781_v0 = vmov 0.0|0.0   ;;  %vm1782_vm0 = vmmov 0   ;;  %v1783_v4 = vmov 0.0   ;;  %vm123_vm1 = vcmask 130048   ;;  %s2197_s2 = inlined_call_operand.vmem [shape: f32[128,128], index: 2, kind: input, shape index: {}]   ;;  %s2198_s3 = inlined_call_operand.vmem [shape: f32[128,128], index: 3, kind: input, shape index: {}]   ;;  %s2199_s1 = inlined_call_operand.vmem [shape: f32[16,128], index: 1, kind: input, shape index: {}]   ;;  %s2200_s0 = inlined_call_operand.vmem [shape: f32[8,8,16], index: 0, kind: input, shape index: {}]   ;;  %s2201_s4 = inlined_call_operand.vmem [shape: f32[1,128], index: 4, kind: input, shape index: {}]   ;;  %s2202_s6 = inlined_call_operand.vmem [shape: f32[1,128], index: 6, kind: input, shape index: {}]   ;;  %s2203_s5 = inlined_call_operand.vmem [shape: f32[1,128], index: 5, kind: input, shape index: {}]   ;;  %s2204_s7 = inlined_call_operand.vmem [shape: f32[8,8,128], index: 7, kind: output, shape index: {}]  }
   0x1   :  { %1554 = vmatprep.subr.bf16.mxu1 %v1781_v0  ;;  %v30_v1 = vld [vmem:[%s2197_s2] sm:$0xff]  ;;  %v31_v2 = vld [vmem:[%s2197_s2 + $0x8] sm:$0xff]  ;;  %1302 = vmatprep.mubr.msk.f32.mxu1 %vm1782_vm0, %v1783_v4  ;;  %v32_v8 = vld [vmem:[%s2197_s2 + $0x10] sm:$0xff] }
   0x2   :  { %v62_v3 = vld [vmem:[%s2198_s3] sm:$0xff]  ;;  %v46_v5 = vand.u32 2147483647, %v30_v1  ;;  %v47_v6 = vand.u32 2147483647, %v31_v2  ;;  %v63_v7 = vld [vmem:[%s2198_s3 + $0x8] sm:$0xff] }
   0x3   :  { %v33_v9 = vld [vmem:[%s2197_s2 + $0x18] sm:$0xff]  ;;  %v48_v10 = vand.u32 2147483647, %v32_v8  ;;  %v64_v11 = vld [vmem:[%s2198_s3 + $0x10] sm:$0xff]  ;;  %v34_v16 = vld [vmem:[%s2197_s2 + $0x20] sm:$0xff] }
   0x4   :  { %v65_v12 = vld [vmem:[%s2198_s3 + $0x18] sm:$0xff]  ;;  %v78_v13 = vmul.f32 %v62_v3, %v46_v5  ;;  %v79_v14 = vmul.f32 %v63_v7, %v47_v6  ;;  %v49_v15 = vand.u32 2147483647, %v33_v9  ;;  %v35_v17 = vld [vmem:[%s2197_s2 + $0x28] sm:$0xff]  ;;  %v66_v18 = vld [vmem:[%s2198_s3 + $0x20] sm:$0xff] }
   0x5   :  { %v80_v19 = vmul.f32 %v64_v11, %v48_v10  ;;  %v50_v20 = vand.u32 2147483647, %v34_v16  ;;  %v51_v21 = vand.u32 2147483647, %v35_v17  ;;  %v67_v22 = vld [vmem:[%s2198_s3 + $0x28] sm:$0xff]  ;;  %v36_v23 = vld [vmem:[%s2197_s2 + $0x30] sm:$0xff] }
   0x6   :  { %v1866_v24 = vpack.c.bf16 %v79_v14, %v78_v13  ;;  %v81_v25 = vmul.f32 %v65_v12, %v49_v15  ;;  %v37_v26 = vld [vmem:[%s2197_s2 + $0x38] sm:$0xff]  ;;  %v52_v27 = vand.u32 2147483647, %v36_v23  ;;  %v38_v32 = vld [vmem:[%s2197_s2 + $0x40] sm:$0xff]  ;;  %v68_v33 = vld [vmem:[%s2198_s3 + $0x30] sm:$0xff] }
   0x7   :  { %v82_v29 = vmul.f32 %v66_v18, %v50_v20  ;;  %v83_v30 = vmul.f32 %v67_v22, %v51_v21  ;;  %v53_v31 = vand.u32 2147483647, %v37_v26  ;;  %v69_v34 = vld [vmem:[%s2198_s3 + $0x38] sm:$0xff]  ;;  %v39_v35 = vld [vmem:[%s2197_s2 + $0x48] sm:$0xff]  ;;  %v54_v36 = vand.u32 2147483647, %v38_v32 }
   0x8   :  { %1556 = vmatpush3.bf16.msra.mxu1 %v1866_v24  ;;  %v1872_v28 = vpack.c.bf16 %v81_v25, %v80_v19  ;;  %v121_v37 = vld [vmem:[%s2199_s1] sm:$0xff]  ;;  %v84_v39 = vmul.f32 %v68_v33, %v52_v27  ;;  %v55_v41 = vand.u32 2147483647, %v39_v35  ;;  %v40_v42 = vld [vmem:[%s2197_s2 + $0x50] sm:$0xff]  ;;  %v122_v43 = vld [vmem:[%s2199_s1 + $0x8] sm:$0xff] }
   0x9   :  { %1557 = vmatprep.subr.bf16.mxu1 %v1781_v0  ;;  %v1891_v38 = vpack.c.bf16 %v83_v30, %v82_v29  ;;  %v85_v40 = vmul.f32 %v69_v34, %v53_v31  ;;  %v113_v44 = vld [vmem:[%s2200_s0] sm:$0xff]  ;;  %v71_v46 = vld [vmem:[%s2198_s3 + $0x48] sm:$0xff]  ;;  %v41_v47 = vld [vmem:[%s2197_s2 + $0x58] sm:$0xff]  ;;  %v1550_v48 = vpack.c.bf16 %v122_v43, %v121_v37  ;;  %v56_v49 = vand.u32 2147483647, %v40_v42 }
   0xa   :  { %v70_v45 = vld [vmem:[%s2198_s3 + $0x40] sm:$0xff]  ;;  %1258 = vmatprep.mubr.msk.f32.mxu0 %vm123_vm1, %v113_v44  ;;  %v87_v52 = vmul.f32 %v71_v46, %v55_v41  ;;  %v57_v53 = vand.u32 2147483647, %v41_v47  ;;  %v114_v55 = vld [vmem:[%s2200_s0 + $0x8] sm:$0xff]  ;;  %v72_v56 = vld [vmem:[%s2198_s3 + $0x50] sm:$0xff] }
   0xb   :  { %1551 = vmatprep.subr.bf16.mxu0 %v1550_v48  ;;  %v1914_v50 = vpack.c.bf16 %v85_v40, %v84_v39  ;;  %v86_v51 = vmul.f32 %v70_v45, %v54_v36  ;;  %v42_v54 = vld [vmem:[%s2197_s2 + $0x60] sm:$0xff]  ;;  %v73_v57 = vld [vmem:[%s2198_s3 + $0x58] sm:$0xff]  ;;  %v43_v58 = vld [vmem:[%s2197_s2 + $0x68] sm:$0xff]  ;;  %v88_v61 = vmul.f32 %v72_v56, %v56_v49 }
   0xc   :  { %1559 = vmatpush3.bf16.msra.mxu1 %v1872_v28  ;;  %1553 = vmatpush3.bf16.msra.mxu0 %v1550_v48  ;;  %v58_v59 = vand.u32 2147483647, %v42_v54  ;;  %v89_v62 = vmul.f32 %v73_v57, %v57_v53  ;;  %v59_v63 = vand.u32 2147483647, %v43_v58  ;;  %v74_v1 = vld [vmem:[%s2198_s3 + $0x60] sm:$0xff]  ;;  %v75_v2 = vld [vmem:[%s2198_s3 + $0x68] sm:$0xff] }
   0xd   :  { %1560 = vmatprep.subr.bf16.mxu1 %v1781_v0  ;;  %1578 = vmatprep.subr.bf16.mxu0 %v1781_v0  ;;  %v1935_v60 = vpack.c.bf16 %v87_v52, %v86_v51  ;;  %v44_v3 = vld [vmem:[%s2197_s2 + $0x70] sm:$0xff]  ;;  %v45_v5 = vld [vmem:[%s2197_s2 + $0x78] sm:$0xff]  ;;  %v117_v19 = vld [vmem:[%s2200_s0 + $0x20] sm:$0xff] }
   0xe   :  { %v90_v6 = vmul.f32 %v74_v1, %v58_v59  ;;  %v1953_v7 = vpack.c.bf16 %v89_v62, %v88_v61  ;;  %v91_v8 = vmul.f32 %v75_v2, %v59_v63  ;;  %v60_v9 = vand.u32 2147483647, %v44_v3  ;;  %v76_v11 = vld [vmem:[%s2198_s3 + $0x70] sm:$0xff]  ;;  %v77_v12 = vld [vmem:[%s2198_s3 + $0x78] sm:$0xff]  ;;  %v118_v20 = vld [vmem:[%s2200_s0 + $0x28] sm:$0xff] }
   0xf   :  { %1259 = vmatmul.mubr.msk.f32.vlgmr.msra.gmra.mrb[0].mxu0 %vm123_vm1, %v114_v55  ;;  %v61_v10 = vand.u32 2147483647, %v45_v5  ;;  %v115_v17 = vld [vmem:[%s2200_s0 + $0x10] sm:$0xff]  ;;  %v116_v18 = vld [vmem:[%s2200_s0 + $0x18] sm:$0xff]  ;;  %v2034_v26 = vld [vmem:[%s2201_s4] ss:$0 sm:$0xff] }
  0x10   :  { %1562 = vmatpush3.bf16.msra.mxu1 %v1891_v38  ;;  %1580 = vmatpush3.bf16.msra.mxu0 %v1866_v24  ;;  %v1965_v13 = vpack.c.bf16 %v91_v8, %v90_v6  ;;  %v92_v14 = vmul.f32 %v76_v11, %v60_v9  ;;  %v119_v21 = vld [vmem:[%s2200_s0 + $0x30] sm:$0xff]  ;;  %v120_v22 = vld [vmem:[%s2200_s0 + $0x38] sm:$0xff]  ;;  %v2039_v31 = vld [vmem:[%s2202_s6] ss:$0 sm:$0xff] }
  0x11   :  { %1563 = vmatprep.subr.bf16.mxu1 %v1781_v0  ;;  %1581 = vmatprep.subr.bf16.mxu0 %v1781_v0  ;;  %v93_v15 = vmul.f32 %v77_v12, %v61_v10  ;;  %v2046_v34 = vld [vmem:[%s2203_s5] ss:$0 sm:$0xff] }
  0x12   :  { %1261 = vmatprep.mubr.msk.f32.mxu0 %vm123_vm1, %v115_v17 }
  0x13   :  { %v1971_v16 = vpack.c.bf16 %v93_v15, %v92_v14  ;;  %1262 = vmatmul.mubr.msk.f32.gmra.mrb[2].mxu0 %vm123_vm1, %v116_v18 }
  0x14   :  { %1565 = vmatpush3.bf16.msra.mxu1 %v1914_v50  ;;  %1583 = vmatpush3.bf16.msra.mxu0 %v1872_v28 }
  0x15   :  { %1566 = vmatprep.subr.bf16.mxu1 %v1781_v0  ;;  %1584 = vmatprep.subr.bf16.mxu0 %v1781_v0 }
  0x16   :  { %1264 = vmatprep.mubr.msk.f32.mxu0 %vm123_vm1, %v117_v19 }
  0x17   :  { %1265 = vmatmul.mubr.msk.f32.gmra.mrb[4].mxu0 %vm123_vm1, %v118_v20 }
  0x18   :  { %1568 = vmatpush3.bf16.msra.mxu1 %v1935_v60  ;;  %1586 = vmatpush3.bf16.msra.mxu0 %v1891_v38 }
  0x19   :  { %1569 = vmatprep.subr.bf16.mxu1 %v1781_v0  ;;  %1587 = vmatprep.subr.bf16.mxu0 %v1781_v0 }
  0x1a   :  { %1267 = vmatprep.mubr.msk.f32.mxu0 %vm123_vm1, %v119_v21 }
  0x1b   :  { %1268 = vmatmul.mubr.msk.f32.gmra.mrb[6].mxu0 %vm123_vm1, %v120_v22 }
  0x1c   :  { %1571 = vmatpush3.bf16.msra.mxu1 %v1953_v7  ;;  %1589 = vmatpush3.bf16.msra.mxu0 %v1914_v50 }
  0x1d   :  { %1572 = vmatprep.subr.bf16.mxu1 %v1781_v0  ;;  %1590 = vmatprep.subr.bf16.mxu0 %v1781_v0 }
  0x1e   :  { %1337 = vmatprep.mubr.msk.f32.mxu0 %vm1782_vm0, %v1783_v4 }
  0x20   :  { %1574 = vmatpush3.bf16.msra.mxu1 %v1965_v13  ;;  %1592 = vmatpush3.bf16.msra.mxu0 %v1935_v60 }
  0x21   :  { %1575 = vmatprep.subr.bf16.mxu1 %v1781_v0  ;;  %1593 = vmatprep.subr.bf16.mxu0 %v1781_v0 }
  0x24   :  { %1577 = vmatpush3.bf16.msra.mxu1 %v1971_v16  ;;  %1595 = vmatpush3.bf16.msra.mxu0 %v1953_v7 }
  0x25   :  { %1602 = vmatprep.subr.bf16.mxu1 %v1781_v0  ;;  %1596 = vmatprep.subr.bf16.mxu0 %v1781_v0 }
  0x27   :  { %1303 = vmatmul.mubr.f32.vlgmr.msra.gmra.mrb[0].mxu1 %v1783_v4 }
  0x28   :  { %1604 = vmatpush3.bf16.msra.mxu1 %v1866_v24  ;;  %1372 = vmatprep.mubr.msk.f32.mxu1 %vm1782_vm0, %v1783_v4 }
  0x29   :  { %1605 = vmatprep.subr.bf16.mxu1 %v1781_v0  ;;  %1598 = vmatpush3.bf16.msra.mxu0 %v1965_v13 }
  0x2a   :  { %1599 = vmatprep.subr.bf16.mxu0 %v1781_v0 }
  0x2c   :  { %1607 = vmatpush3.bf16.msra.mxu1 %v1872_v28 }
  0x2d   :  { %1608 = vmatprep.subr.bf16.mxu1 %v1781_v0  ;;  %1601 = vmatpush3.bf16.msra.mxu0 %v1971_v16 }
  0x2e   :  { %1626 = vmatprep.subr.bf16.mxu0 %v1781_v0 }
  0x30   :  { %1610 = vmatpush3.bf16.msra.mxu1 %v1891_v38 }
  0x31   :  { %1611 = vmatprep.subr.bf16.mxu1 %v1781_v0 }
  0x34   :  { %1613 = vmatpush3.bf16.msra.mxu1 %v1914_v50 }
  0x35   :  { %1614 = vmatprep.subr.bf16.mxu1 %v1781_v0 }
  0x38   :  { %1616 = vmatpush3.bf16.msra.mxu1 %v1935_v60 }
  0x39   :  { %1617 = vmatprep.subr.bf16.mxu1 %v1781_v0 }
  0x3c   :  { %1619 = vmatpush3.bf16.msra.mxu1 %v1953_v7 }
  0x3d   :  { %1620 = vmatprep.subr.bf16.mxu1 %v1781_v0 }
  0x40   :  { %1622 = vmatpush3.bf16.msra.mxu1 %v1965_v13 }
  0x41   :  { %1623 = vmatprep.subr.bf16.mxu1 %v1781_v0 }
  0x44   :  { %1625 = vmatpush3.bf16.msra.mxu1 %v1971_v16 }
  0x45   :  { %1650 = vmatprep.subr.bf16.mxu1 %v1781_v0 }
  0xe2   :  { %v1260_v23 = vpop.f32.mrb[0].mxu0 }
  0xe3   :  { %v214_v25 = vpop.f32.mrb[1].mxu0 }
  0xe6   :  { %v2070_v39 = vpop.f32.mrb[2].mxu0 }
  0xe7   :  { %v224_v40 = vpop.f32.mrb[3].mxu0 }
  0xea   :  { %v2072_v41 = vpop.f32.mrb[4].mxu0 }
  0xeb   :  { %v2074_v42 = vpop.f32.mrb[5].mxu0 }
  0xee   :  { %v2076_v43 = vpop.f32.mrb[6].mxu0 }
  0xef   :  { %v2078_v44 = vpop.f32.mrb[7].mxu0 }
  0xfa   :  { %v349_v27 = vpop.f32.mrb[0].mxu1 }
  0xfb   :  { %v354_v29 = vadd.f32 %v349_v27, %v214_v25  ;;  %v1304_v30 = vpop.f32.mrb[1].mxu1 }
  0xfd   :  { %v361_v32 = vadd.f32 %v2034_v26, %v354_v29 }
  0xff   :  { %v369_v33 = vmul.f32 %v2039_v31, %v361_v32 }
 0x101   :  { %1749 = vtanh.f32 %v369_v33 }
 0x10b   :  { %v1750_v35 = vpop.eup %1749 }
 0x10c   :  { %v379_v36 = vmul.f32 %v1750_v35, %v2046_v34 }
 0x10e   :  { %1751 = vtanh.f32 %v379_v36 }
 0x118   :  { %v1752_v37 = vpop.eup %1751 }
 0x119   :  { %382 = vst [vmem:[%s2204_s7] sm:$0xff] %v1752_v37  ;;  %1338 = vmatmul.mubr.f32.vlgmr.msra.gmra.mrb[8].mxu0 %v1752_v37 }
 0x11a   :  { %1628 = vmatpush3.bf16.msra.mxu0 %v1866_v24  ;;  %1407 = vmatprep.mubr.msk.f32.mxu0 %vm1782_vm0, %v1783_v4 }
 0x11b   :  { %1629 = vmatprep.subr.bf16.mxu0 %v1781_v0 }
 0x11e   :  { %1631 = vmatpush3.bf16.msra.mxu0 %v1872_v28 }
 0x11f   :  { %1632 = vmatprep.subr.bf16.mxu0 %v1781_v0 }
 0x122   :  { %1634 = vmatpush3.bf16.msra.mxu0 %v1891_v38 }
 0x123   :  { %1635 = vmatprep.subr.bf16.mxu0 %v1781_v0 }
 0x126   :  { %1637 = vmatpush3.bf16.msra.mxu0 %v1914_v50 }
 0x127   :  { %1638 = vmatprep.subr.bf16.mxu0 %v1781_v0 }
 0x12a   :  { %1640 = vmatpush3.bf16.msra.mxu0 %v1935_v60 }
 0x12b   :  { %1641 = vmatprep.subr.bf16.mxu0 %v1781_v0 }
 0x12e   :  { %1643 = vmatpush3.bf16.msra.mxu0 %v1953_v7 }
 0x12f   :  { %1644 = vmatprep.subr.bf16.mxu0 %v1781_v0 }
 0x132   :  { %1646 = vmatpush3.bf16.msra.mxu0 %v1965_v13 }
 0x133   :  { %1647 = vmatprep.subr.bf16.mxu0 %v1781_v0 }
 0x136   :  { %1649 = vmatpush3.bf16.msra.mxu0 %v1971_v16 }
 0x137   :  { %1674 = vmatprep.subr.bf16.mxu0 %v1781_v0 }
 0x1ec   :  { %v465_v45 = vpop.f32.mrb[8].mxu0 }
 0x1ed   :  { %v471_v46 = vadd.f32 %v1260_v23, %v465_v45  ;;  %v1339_v47 = vpop.f32.mrb[9].mxu0 }
 0x1ef   :  { %v472_v48 = vadd.f32 %v2034_v26, %v471_v46 }
 0x1f1   :  { %v473_v49 = vsub.f32 %v472_v48, %v369_v33 }
 0x1f3   :  { %v474_v51 = vmul.f32 %v2039_v31, %v473_v49 }
 0x1f5   :  { %v475_v52 = vadd.f32 %v474_v51, %v369_v33 }
 0x1f7   :  { %1753 = vtanh.f32 %v475_v52 }
 0x201   :  { %v1754_v53 = vpop.eup %1753 }
 0x202   :  { %v477_v54 = vsub.f32 %v1754_v53, %v379_v36 }
 0x204   :  { %v478_v55 = vmul.f32 %v2046_v34, %v477_v54 }
 0x206   :  { %v479_v56 = vadd.f32 %v478_v55, %v379_v36 }
 0x208   :  { %1755 = vtanh.f32 %v479_v56 }
 0x212   :  { %v1756_v57 = vpop.eup %1755 }
 0x213   :  { %1101 = vst [vmem:[%s2204_s7 + $0x8] sm:$0xff] %v1756_v57  ;;  %1373 = vmatmul.mubr.f32.vlgmr.msra.gmra.mrb[2].mxu1 %v1756_v57 }
 0x214   :  { %1652 = vmatpush3.bf16.msra.mxu1 %v1866_v24  ;;  %1442 = vmatprep.mubr.msk.f32.mxu1 %vm1782_vm0, %v1783_v4 }
 0x215   :  { %1653 = vmatprep.subr.bf16.mxu1 %v1781_v0 }
 0x218   :  { %1655 = vmatpush3.bf16.msra.mxu1 %v1872_v28 }
 0x219   :  { %1656 = vmatprep.subr.bf16.mxu1 %v1781_v0 }
 0x21c   :  { %1658 = vmatpush3.bf16.msra.mxu1 %v1891_v38 }
 0x21d   :  { %1659 = vmatprep.subr.bf16.mxu1 %v1781_v0 }
 0x220   :  { %1661 = vmatpush3.bf16.msra.mxu1 %v1914_v50 }
 0x221   :  { %1662 = vmatprep.subr.bf16.mxu1 %v1781_v0 }
 0x224   :  { %1664 = vmatpush3.bf16.msra.mxu1 %v1935_v60 }
 0x225   :  { %1665 = vmatprep.subr.bf16.mxu1 %v1781_v0 }
 0x228   :  { %1667 = vmatpush3.bf16.msra.mxu1 %v1953_v7 }
 0x229   :  { %1668 = vmatprep.subr.bf16.mxu1 %v1781_v0 }
 0x22c   :  { %1670 = vmatpush3.bf16.msra.mxu1 %v1965_v13 }
 0x22d   :  { %1671 = vmatprep.subr.bf16.mxu1 %v1781_v0 }
 0x230   :  { %1673 = vmatpush3.bf16.msra.mxu1 %v1971_v16 }
 0x231   :  { %1698 = vmatprep.subr.bf16.mxu1 %v1781_v0 }
 0x2e6   :  { %v565_v58 = vpop.f32.mrb[2].mxu1 }
 0x2e7   :  { %v571_v59 = vadd.f32 %v565_v58, %v224_v40  ;;  %v1374_v61 = vpop.f32.mrb[3].mxu1 }
 0x2e9   :  { %v572_v62 = vadd.f32 %v2034_v26, %v571_v59 }
 0x2eb   :  { %v573_v63 = vsub.f32 %v572_v62, %v475_v52 }
 0x2ed   :  { %v574_v1 = vmul.f32 %v2039_v31, %v573_v63 }
 0x2ef   :  { %v575_v2 = vadd.f32 %v574_v1, %v475_v52 }
 0x2f1   :  { %1757 = vtanh.f32 %v575_v2 }
 0x2fb   :  { %v1758_v3 = vpop.eup %1757 }
 0x2fc   :  { %v577_v5 = vsub.f32 %v1758_v3, %v479_v56 }
 0x2fe   :  { %v578_v6 = vmul.f32 %v2046_v34, %v577_v5 }
 0x300   :  { %v579_v8 = vadd.f32 %v578_v6, %v479_v56 }
 0x302   :  { %1759 = vtanh.f32 %v579_v8 }
 0x30c   :  { %v1760_v9 = vpop.eup %1759 }
 0x30d   :  { %1102 = vst [vmem:[%s2204_s7 + $0x10] sm:$0xff] %v1760_v9  ;;  %1408 = vmatmul.mubr.f32.vlgmr.msra.gmra.mrb[10].mxu0 %v1760_v9 }
 0x30e   :  { %1676 = vmatpush3.bf16.msra.mxu0 %v1866_v24  ;;  %1477 = vmatprep.mubr.msk.f32.mxu0 %vm1782_vm0, %v1783_v4 }
 0x30f   :  { %1677 = vmatprep.subr.bf16.mxu0 %v1781_v0 }
 0x312   :  { %1679 = vmatpush3.bf16.msra.mxu0 %v1872_v28 }
 0x313   :  { %1680 = vmatprep.subr.bf16.mxu0 %v1781_v0 }
 0x316   :  { %1682 = vmatpush3.bf16.msra.mxu0 %v1891_v38 }
 0x317   :  { %1683 = vmatprep.subr.bf16.mxu0 %v1781_v0 }
 0x31a   :  { %1685 = vmatpush3.bf16.msra.mxu0 %v1914_v50 }
 0x31b   :  { %1686 = vmatprep.subr.bf16.mxu0 %v1781_v0 }
 0x31e   :  { %1688 = vmatpush3.bf16.msra.mxu0 %v1935_v60 }
 0x31f   :  { %1689 = vmatprep.subr.bf16.mxu0 %v1781_v0 }
 0x322   :  { %1691 = vmatpush3.bf16.msra.mxu0 %v1953_v7 }
 0x323   :  { %1692 = vmatprep.subr.bf16.mxu0 %v1781_v0 }
 0x326   :  { %1694 = vmatpush3.bf16.msra.mxu0 %v1965_v13 }
 0x327   :  { %1695 = vmatprep.subr.bf16.mxu0 %v1781_v0 }
 0x32a   :  { %1697 = vmatpush3.bf16.msra.mxu0 %v1971_v16 }
 0x32b   :  { %1722 = vmatprep.subr.bf16.mxu0 %v1781_v0 }
 0x3e0   :  { %v665_v10 = vpop.f32.mrb[10].mxu0 }
 0x3e1   :  { %v671_v11 = vadd.f32 %v2070_v39, %v665_v10  ;;  %v1409_v12 = vpop.f32.mrb[11].mxu0 }
 0x3e3   :  { %v672_v14 = vadd.f32 %v2034_v26, %v671_v11 }
 0x3e5   :  { %v673_v15 = vsub.f32 %v672_v14, %v575_v2 }
 0x3e7   :  { %v674_v17 = vmul.f32 %v2039_v31, %v673_v15 }
 0x3e9   :  { %v675_v18 = vadd.f32 %v674_v17, %v575_v2 }
 0x3eb   :  { %1761 = vtanh.f32 %v675_v18 }
 0x3f5   :  { %v1762_v19 = vpop.eup %1761 }
 0x3f6   :  { %v677_v20 = vsub.f32 %v1762_v19, %v579_v8 }
 0x3f8   :  { %v678_v21 = vmul.f32 %v2046_v34, %v677_v20 }
 0x3fa   :  { %v679_v22 = vadd.f32 %v678_v21, %v579_v8 }
 0x3fc   :  { %1763 = vtanh.f32 %v679_v22 }
 0x406   :  { %v1764_v23 = vpop.eup %1763 }
 0x407   :  { %1103 = vst [vmem:[%s2204_s7 + $0x18] sm:$0xff] %v1764_v23  ;;  %1443 = vmatmul.mubr.f32.vlgmr.msra.gmra.mrb[4].mxu1 %v1764_v23 }
 0x408   :  { %1700 = vmatpush3.bf16.msra.mxu1 %v1866_v24  ;;  %1512 = vmatprep.mubr.msk.f32.mxu1 %vm1782_vm0, %v1783_v4 }
 0x409   :  { %1701 = vmatprep.subr.bf16.mxu1 %v1781_v0 }
 0x40c   :  { %1703 = vmatpush3.bf16.msra.mxu1 %v1872_v28 }
 0x40d   :  { %1704 = vmatprep.subr.bf16.mxu1 %v1781_v0 }
 0x410   :  { %1706 = vmatpush3.bf16.msra.mxu1 %v1891_v38 }
 0x411   :  { %1707 = vmatprep.subr.bf16.mxu1 %v1781_v0 }
 0x414   :  { %1709 = vmatpush3.bf16.msra.mxu1 %v1914_v50 }
 0x415   :  { %1710 = vmatprep.subr.bf16.mxu1 %v1781_v0 }
 0x418   :  { %1712 = vmatpush3.bf16.msra.mxu1 %v1935_v60 }
 0x419   :  { %1713 = vmatprep.subr.bf16.mxu1 %v1781_v0 }
 0x41c   :  { %1715 = vmatpush3.bf16.msra.mxu1 %v1953_v7 }
 0x41d   :  { %1716 = vmatprep.subr.bf16.mxu1 %v1781_v0 }
 0x420   :  { %1718 = vmatpush3.bf16.msra.mxu1 %v1965_v13 }
 0x421   :  { %1719 = vmatprep.subr.bf16.mxu1 %v1781_v0 }
 0x424   :  { %1721 = vmatpush3.bf16.msra.mxu1 %v1971_v16 }
 0x4da   :  { %v765_v25 = vpop.f32.mrb[4].mxu1 }
 0x4db   :  { %v771_v27 = vadd.f32 %v765_v25, %v2074_v42  ;;  %v1444_v29 = vpop.f32.mrb[5].mxu1 }
 0x4dd   :  { %v772_v30 = vadd.f32 %v2034_v26, %v771_v27 }
 0x4df   :  { %v773_v32 = vsub.f32 %v772_v30, %v675_v18 }
 0x4e1   :  { %v774_v33 = vmul.f32 %v2039_v31, %v773_v32 }
 0x4e3   :  { %v775_v35 = vadd.f32 %v774_v33, %v675_v18 }
 0x4e5   :  { %1765 = vtanh.f32 %v775_v35 }
 0x4ef   :  { %v1766_v36 = vpop.eup %1765 }
 0x4f0   :  { %v777_v37 = vsub.f32 %v1766_v36, %v679_v22 }
 0x4f2   :  { %v778_v39 = vmul.f32 %v2046_v34, %v777_v37 }
 0x4f4   :  { %v779_v40 = vadd.f32 %v778_v39, %v679_v22 }
 0x4f6   :  { %1767 = vtanh.f32 %v779_v40 }
 0x500   :  { %v1768_v45 = vpop.eup %1767 }
 0x501   :  { %1104 = vst [vmem:[%s2204_s7 + $0x20] sm:$0xff] %v1768_v45  ;;  %1478 = vmatmul.mubr.f32.vlgmr.msra.gmra.mrb[12].mxu0 %v1768_v45 }
 0x502   :  { %1724 = vmatpush3.bf16.msra.mxu0 %v1866_v24  ;;  %1547 = vmatprep.mubr.msk.f32.mxu0 %vm1782_vm0, %v1783_v4 }
 0x503   :  { %1725 = vmatprep.subr.bf16.mxu0 %v1781_v0 }
 0x506   :  { %1727 = vmatpush3.bf16.msra.mxu0 %v1872_v28 }
 0x507   :  { %1728 = vmatprep.subr.bf16.mxu0 %v1781_v0 }
 0x50a   :  { %1730 = vmatpush3.bf16.msra.mxu0 %v1891_v38 }
 0x50b   :  { %1731 = vmatprep.subr.bf16.mxu0 %v1781_v0 }
 0x50e   :  { %1733 = vmatpush3.bf16.msra.mxu0 %v1914_v50 }
 0x50f   :  { %1734 = vmatprep.subr.bf16.mxu0 %v1781_v0 }
 0x512   :  { %1736 = vmatpush3.bf16.msra.mxu0 %v1935_v60 }
 0x513   :  { %1737 = vmatprep.subr.bf16.mxu0 %v1781_v0 }
 0x516   :  { %1739 = vmatpush3.bf16.msra.mxu0 %v1953_v7 }
 0x517   :  { %1740 = vmatprep.subr.bf16.mxu0 %v1781_v0 }
 0x51a   :  { %1742 = vmatpush3.bf16.msra.mxu0 %v1965_v13 }
 0x51b   :  { %1743 = vmatprep.subr.bf16.mxu0 %v1781_v0 }
 0x51e   :  { %1745 = vmatpush3.bf16.msra.mxu0 %v1971_v16 }
 0x5d4   :  { %v865_v4 = vpop.f32.mrb[12].mxu0 }
 0x5d5   :  { %v871_v24 = vadd.f32 %v2072_v41, %v865_v4  ;;  %v1479_v28 = vpop.f32.mrb[13].mxu0 }
 0x5d7   :  { %v872_v38 = vadd.f32 %v2034_v26, %v871_v24 }
 0x5d9   :  { %v873_v50 = vsub.f32 %v872_v38, %v775_v35 }
 0x5db   :  { %v874_v60 = vmul.f32 %v2039_v31, %v873_v50 }
 0x5dd   :  { %v875_v42 = vadd.f32 %v874_v60, %v775_v35 }
 0x5df   :  { %1769 = vtanh.f32 %v875_v42 }
 0x5e9   :  { %v1770_v7 = vpop.eup %1769 }
 0x5ea   :  { %v877_v46 = vsub.f32 %v1770_v7, %v779_v40 }
 0x5ec   :  { %v878_v47 = vmul.f32 %v2046_v34, %v877_v46 }
 0x5ee   :  { %v879_v13 = vadd.f32 %v878_v47, %v779_v40 }
 0x5f0   :  { %1771 = vtanh.f32 %v879_v13 }
 0x5fa   :  { %v1772_v0 = vpop.eup %1771 }
 0x5fb   :  { %1105 = vst [vmem:[%s2204_s7 + $0x28] sm:$0xff] %v1772_v0  ;;  %1513 = vmatmul.mubr.f32.vlgmr.msra.gmra.mrb[6].mxu1 %v1772_v0 }
 0x6ce   :  { %v965_v16 = vpop.f32.mrb[6].mxu1 }
 0x6cf   :  { %v971_v41 = vadd.f32 %v965_v16, %v2078_v44  ;;  %v1514_v48 = vpop.f32.mrb[7].mxu1 }
 0x6d1   :  { %v972_v49 = vadd.f32 %v2034_v26, %v971_v41 }
 0x6d3   :  { %v973_v51 = vsub.f32 %v972_v49, %v875_v42 }
 0x6d5   :  { %v974_v52 = vmul.f32 %v2039_v31, %v973_v51 }
 0x6d7   :  { %v975_v53 = vadd.f32 %v974_v52, %v875_v42 }
 0x6d9   :  { %1773 = vtanh.f32 %v975_v53 }
 0x6e3   :  { %v1774_v54 = vpop.eup %1773 }
 0x6e4   :  { %v977_v55 = vsub.f32 %v1774_v54, %v879_v13 }
 0x6e6   :  { %v978_v56 = vmul.f32 %v2046_v34, %v977_v55 }
 0x6e8   :  { %v979_v57 = vadd.f32 %v978_v56, %v879_v13 }
 0x6ea   :  { %1775 = vtanh.f32 %v979_v57 }
 0x6f4   :  { %v1776_v58 = vpop.eup %1775 }
 0x6f5   :  { %1106 = vst [vmem:[%s2204_s7 + $0x30] sm:$0xff] %v1776_v58  ;;  %1548 = vmatmul.mubr.f32.vlgmr.msra.gmra.mrb[14].mxu0 %v1776_v58 }
 0x7c8   :  { %v1065_v44 = vpop.f32.mrb[14].mxu0 }
 0x7c9   :  { %v1071_v59 = vadd.f32 %v2076_v43, %v1065_v44  ;;  %v1549_v61 = vpop.f32.mrb[15].mxu0 }
 0x7cb   :  { %v1072_v62 = vadd.f32 %v2034_v26, %v1071_v59 }
 0x7cd   :  { %v1073_v63 = vsub.f32 %v1072_v62, %v975_v53 }
 0x7cf   :  { %v1074_v1 = vmul.f32 %v2039_v31, %v1073_v63 }
 0x7d1   :  { %v1075_v2 = vadd.f32 %v1074_v1, %v975_v53 }
 0x7d3   :  { %1777 = vtanh.f32 %v1075_v2 }
 0x7dd   :  { %v1778_v3 = vpop.eup %1777 }
 0x7de   :  { %v1077_v5 = vsub.f32 %v1778_v3, %v979_v57 }
 0x7e0   :  { %v1078_v6 = vmul.f32 %v2046_v34, %v1077_v5 }
 0x7e2   :  { %v1079_v8 = vadd.f32 %v1078_v6, %v979_v57 }
 0x7e4   :  { %1779 = vtanh.f32 %v1079_v8 }
 0x7ee   :  { %v1780_v9 = vpop.eup %1779 }
 0x7ef   :  { %1107 = vst [vmem:[%s2204_s7 + $0x38] sm:$0xff] %v1780_v9 }

</bundles_post_ra>
